<compile_context>
chip_gen: v7x
topology: tpu7x:2x2x1
jax: 0.10.0
libtpu: 0.0.40
codegen_flags: <defaults>
</compile_context>

<pallas_src>
import jax
import jax.numpy as jnp
from jax.experimental import pallas as pl
from jax.experimental.pallas import tpu as pltpu

C_OUT = 16          # conv output channels
HP = 6              # padded spatial extent: 4 + 2*1
P = HP * HP         # 36 spatial positions per channel
FEAT = C_OUT * P    # 576 flattened features
OUT = 128           # linear output features
MAX_TILE_B = 512    # batch tile (multiple of 8; modest VMEM footprint)


def _fused_kernel(x_ref, w_ref, b_ref, o_ref):
    # x_ref : (TILE_B, 36)  zero-padded, flattened single-channel input (VMEM)
    # w_ref : (36, 128)     conv-folded effective linear weight        (VMEM)
    # b_ref : (1, 128)      conv-folded effective bias                 (VMEM)
    # o_ref : (TILE_B, 128)
    y = jnp.dot(x_ref[...], w_ref[...], preferred_element_type=jnp.float32)
    y = y + b_ref[...]                                   # broadcast (1,128)
    o_ref[...] = jnp.clip(y + 3.0, 0.0, 6.0) * (1.0 / 6.0)   # hard-sigmoid (fp32)


def model_forward(x, w_conv, b_conv, w_lin, b_lin):
    """x: (B, 1, 4, 4) NCHW float.  Returns (B, 128) float32."""
    B = x.shape[0]

    # ---- Parameter prep (wrapper-side, pure algebra: fold 1x1 conv into linear) ----
    wconv = w_conv.reshape(C_OUT).astype(jnp.float32)                 # (16,)
    bconv = b_conv.reshape(C_OUT).astype(jnp.float32)                 # (16,)
    wt = w_lin.astype(jnp.float32).T.reshape(C_OUT, P, OUT)           # (16, 36, 128)
    w_eff = jnp.einsum("c,cpo->po", wconv, wt)                        # (36, 128)
    b_eff = (b_lin.astype(jnp.float32)
             + jnp.einsum("c,cpo->o", bconv, wt)).reshape(1, OUT)     # (1, 128)

    # ---- Layout glue: zero-pad (padding=1) and flatten the single channel ----
    xp = jnp.pad(x.astype(jnp.float32),
                 ((0, 0), (0, 0), (1, 1), (1, 1))).reshape(B, P)      # (B, 36)

    # ---- Batch tiling: 8-sublane aligned, pad remainder with zero rows ----
    tile_b = max(8, min(MAX_TILE_B, ((B + 7) // 8) * 8))
    b_pad = ((B + tile_b - 1) // tile_b) * tile_b
    if b_pad != B:
        xp = jnp.pad(xp, ((0, b_pad - B), (0, 0)))
    grid = (b_pad // tile_b,)

    out = pl.pallas_call(
        _fused_kernel,
        out_shape=jax.ShapeDtypeStruct((b_pad, OUT), jnp.float32),
        grid_spec=pltpu.PrefetchScalarGridSpec(
            num_scalar_prefetch=0,
            grid=grid,
            in_specs=[
                pl.BlockSpec((tile_b, P), lambda i: (i, 0)),   # activations: tiled over batch
                pl.BlockSpec((P, OUT), lambda i: (0, 0)),      # folded weight: resident
                pl.BlockSpec((1, OUT), lambda i: (0, 0)),      # folded bias: resident
            ],
            out_specs=pl.BlockSpec((tile_b, OUT), lambda i: (i, 0)),
        ),
        compiler_params=pltpu.CompilerParams(
            dimension_semantics=("parallel",),   # shard batch tiles across TCs (v7x)
        ),
    )(xp, w_eff, b_eff)
    return out[:B]


def _reference(x, w_conv, b_conv, w_lin, b_lin):
    """Pure-JAX unfolded reference matching the torch module."""
    B = x.shape[0]
    xp = jnp.pad(x, ((0, 0), (0, 0), (1, 1), (1, 1)))                     # (B,1,6,6)
    conv = w_conv.reshape(1, C_OUT, 1, 1) * xp + b_conv.reshape(1, C_OUT, 1, 1)
    flat = conv.reshape(B, FEAT)                                          # channel-major
    return jnp.clip(flat @ w_lin.T + b_lin + 3.0, 0.0, 6.0) / 6.0


if __name__ == "__main__":
    key = jax.random.PRNGKey(0)
    k1, k2, k3, k4, k5 = jax.random.split(key, 5)
    B = 2
    # Deterministic synthetic parameters (shapes from the module __init__).
    x = jax.random.normal(k1, (B, 1, 4, 4), dtype=jnp.float32)
    w_conv = jax.random.normal(k2, (C_OUT, 1, 1, 1), dtype=jnp.float32) * 0.5
    b_conv = jax.random.normal(k3, (C_OUT,), dtype=jnp.float32) * 0.1
    w_lin = jax.random.normal(k4, (OUT, FEAT), dtype=jnp.float32) * (1.0 / jnp.sqrt(FEAT))
    b_lin = jax.random.normal(k5, (OUT,), dtype=jnp.float32) * 0.1

    out = jax.block_until_ready(model_forward(x, w_conv, b_conv, w_lin, b_lin))
    ref = _reference(x, w_conv, b_conv, w_lin, b_lin)
    assert out.shape == (B, OUT) and out.dtype == jnp.float32
    assert jnp.allclose(out, ref, atol=1e-4, rtol=1e-3), "Pallas kernel mismatch vs reference"

    # Exercise the batched grid / remainder-padding path as well.
    B2 = 300
    x2 = jax.random.normal(jax.random.PRNGKey(1), (B2, 1, 4, 4), dtype=jnp.float32)
    out2 = jax.block_until_ready(model_forward(x2, w_conv, b_conv, w_lin, b_lin))
    ref2 = _reference(x2, w_conv, b_conv, w_lin, b_lin)
    assert out2.shape == (B2, OUT)
    assert jnp.allclose(out2, ref2, atol=1e-4, rtol=1e-3), "Pallas kernel mismatch (batched path)"

    print("KERNEL_OK")
</pallas_src>

<mosaic_0001>
module attributes {stable_mosaic.version = 11 : i64} {
  func.func @_fused_kernel(%arg0: i32, %arg1: memref<8x36xf32, #tpu.memory_space<vmem>>, %arg2: memref<36x128xf32, #tpu.memory_space<vmem>>, %arg3: memref<1x128xf32, #tpu.memory_space<vmem>>, %arg4: memref<8x128xf32, #tpu.memory_space<vmem>>) attributes {dimension_semantics = [#tpu.dimension_semantics<parallel>], iteration_bounds = array<i64: 1>, scalar_prefetch = 0 : i64, scratch_operands = 0 : i64, tpu.core_type = #tpu.core_type<tc>, window_params = [{transform_indices = @transform_0, window_bounds = array<i64: 8, 36>}, {pipeline_mode = #tpu.pipeline_mode<synchronous>, transform_indices = @transform_1, window_bounds = array<i64: 36, 128>}, {pipeline_mode = #tpu.pipeline_mode<synchronous>, transform_indices = @transform_2, window_bounds = array<i64: 1, 128>}, {transform_indices = @transform_3, window_bounds = array<i64: 8, 128>}]} {
    %c0 = arith.constant 0 : index
    %c0_0 = arith.constant 0 : index
    %0 = vector.load %arg1[%c0, %c0_0] : memref<8x36xf32, #tpu.memory_space<vmem>>, vector<8x36xf32>
    %c0_1 = arith.constant 0 : index
    %c0_2 = arith.constant 0 : index
    %1 = vector.load %arg2[%c0_1, %c0_2] : memref<36x128xf32, #tpu.memory_space<vmem>>, vector<36x128xf32>
    %cst = arith.constant dense<0.000000e+00> : vector<8x128xf32>
    %2 = tpu.matmul %0, %1, %cst {dimension_numbers = #tpu.dot_dimension_numbers<[1], [0], [0], [1], [0, 0, 1, 1], [], []>} : vector<8x36xf32>, vector<36x128xf32>, vector<8x128xf32> -> vector<8x128xf32>
    %c0_3 = arith.constant 0 : index
    %c0_4 = arith.constant 0 : index
    %3 = vector.load %arg3[%c0_3, %c0_4] : memref<1x128xf32, #tpu.memory_space<vmem>>, vector<1x128xf32>
    %4 = vector.broadcast %3 : vector<1x128xf32> to vector<8x128xf32>
    %5 = arith.addf %2, %4 : vector<8x128xf32>
    %cst_5 = arith.constant 3.000000e+00 : f32
    %6 = vector.broadcast %cst_5 : f32 to vector<8x128xf32>
    %7 = arith.addf %5, %6 : vector<8x128xf32>
    %cst_6 = arith.constant 0.000000e+00 : f32
    %cst_7 = arith.constant 6.000000e+00 : f32
    %8 = vector.broadcast %cst_6 : f32 to vector<8x128xf32>
    %9 = arith.maximumf %8, %7 : vector<8x128xf32>
    %10 = vector.broadcast %cst_7 : f32 to vector<8x128xf32>
    %11 = arith.minimumf %10, %9 : vector<8x128xf32>
    %cst_8 = arith.constant 0.166666672 : f32
    %12 = vector.broadcast %cst_8 : f32 to vector<8x128xf32>
    %13 = arith.mulf %11, %12 : vector<8x128xf32>
    %c0_9 = arith.constant 0 : index
    %c0_10 = arith.constant 0 : index
    %14 = vector.load %arg4[%c0_9, %c0_10] : memref<8x128xf32, #tpu.memory_space<vmem>>, vector<8x128xf32>
    tpu.vector_store %arg4[%c0_9, %c0_10], %13 {strides = array<i32>} : memref<8x128xf32, #tpu.memory_space<vmem>>, vector<8x128xf32>,
    return
  }
  func.func @transform_0(%arg0: i32) -> (i32, i32) {
    %c0_i32 = arith.constant 0 : i32
    %c0_i32_0 = arith.constant 0 : i32
    return %arg0, %c0_i32 : i32, i32
  }
  func.func @transform_1(%arg0: i32) -> (i32, i32) {
    %c0_i32 = arith.constant 0 : i32
    %c0_i32_0 = arith.constant 0 : i32
    %c0_i32_1 = arith.constant 0 : i32
    return %c0_i32, %c0_i32_0 : i32, i32
  }
  func.func @transform_2(%arg0: i32) -> (i32, i32) {
    %c0_i32 = arith.constant 0 : i32
    %c0_i32_0 = arith.constant 0 : i32
    %c0_i32_1 = arith.constant 0 : i32
    return %c0_i32, %c0_i32_0 : i32, i32
  }
  func.func @transform_3(%arg0: i32) -> (i32, i32) {
    %c0_i32 = arith.constant 0 : i32
    %c0_i32_0 = arith.constant 0 : i32
    return %arg0, %c0_i32 : i32, i32
  }
}

</mosaic_0001>

<bundles_post_ra>
// kernel: tpu_custom_call.1
= control target key start
LH: loop header
LB: loop body
LE: loop exit
PB: predicated region body
PF: predicated region fallthrough
CT: control target
= control target key end

     0   :  { %8 = vsyncpa [#allocation3], 0  ;;  %s335_s0 = inlined_call_operand.hbm [shape: f32[8,36], index: 0, kind: input, shape index: {}]   ;;  %s336_s1 = inlined_call_operand.hbm [shape: f32[36,128], index: 1, kind: input, shape index: {}]   ;;  %s337_s2 = inlined_call_operand.vmem [shape: f32[1,128], index: 2, kind: input, shape index: {}]   ;;  %s338_s3 = inlined_call_operand.hbm [shape: f32[8,128], index: 3, kind: output, shape index: {}]  }
   0x1   :  { %9 = vsyncpa [#allocation6], 0 }
   0x2   :  { %10 = vsyncpa [#allocation4], 0  ;;  %s261_s12 = smov [#allocation2]   ;;  %s262_s14 = smov [#allocation5]  }
   0x3   :  { %s17_s13 = sshll.u32 %s261_s12, 4  ;;  %s26_s15 = sshll.u32 %s262_s14, 4  ;;  %s18_s13 = int_to_ptr.vmem [resolvable:$true] %s17_s13  ;;  %s289_s15 = int_to_ptr.vmem [resolvable:$true] %s26_s15 }
   0x4   :  { %s189_s18 = scalar_lea.hbm %s335_s0, 128 }
   0x5   :  { %p190_p0 = scmp.ne.s32.totalorder %s335_s0, %s189_s18  ;;  %p193_p1 = scmp.lt.u32.totalorder %s189_s18, %s335_s0 }
   0x7   :  { %p195_p2 = pnand %p193_p1, %p190_p0 }
   0x9   :  { %198 = shalt.err (!%p195_p2)
}
   0xa   :  { %s199_s23 = scalar_lea.vmem %s18_s13, 128  ;;  %p204_p4 = scmp.lt.s32.totalorder %s18_s13, %s18_s13 }
   0xb   :  { %p200_p3 = scmp.ne.s32.totalorder %s18_s13, %s199_s23  ;;  %p205_p5 = scmp.lt.s32.totalorder %s199_s23, %s199_s23 }
   0xd   :  { %p206_p6 = por %p205_p5, %p204_p4 }
   0xf   :  { %p207_p7 = pnand %p206_p6, %p200_p3 }
  0x11   :  { %210 = shalt.err (!%p207_p7)
}
  0x12   :  { %20 = dma.hbm_to_vmem [thread:$0]  %s335_s0, 128, %s18_s13, [#allocation3]  }
  0x13   :  { %s211_s28 = scalar_lea.hbm %s336_s1, 640 }
  0x14   :  { %p212_p8 = scmp.ne.s32.totalorder %s336_s1, %s211_s28  ;;  %p215_p9 = scmp.lt.u32.totalorder %s211_s28, %s336_s1 }
  0x16   :  { %p217_p10 = pnand %p215_p9, %p212_p8 }
  0x18   :  { %220 = shalt.err (!%p217_p10)
}
  0x19   :  { %s221_s6 = scalar_lea.vmem %s289_s15, 640  ;;  %p226_p12 = scmp.lt.s32.totalorder %s289_s15, %s289_s15 }
  0x1a   :  { %p222_p11 = scmp.ne.s32.totalorder %s289_s15, %s221_s6  ;;  %p227_p13 = scmp.lt.s32.totalorder %s221_s6, %s221_s6 }
  0x1c   :  { %p228_p0 = por %p227_p13, %p226_p12 }
  0x1e   :  { %p229_p1 = pnand %p228_p0, %p222_p11 }
  0x20   :  { %232 = shalt.err (!%p229_p1)
}
  0x21   :  { %s263_s0 = smov 128   ;;  %s264_s7 = smov 8  }
  0x22   :  { %32 = dma.hbm_to_vmem [thread:$0]  %s336_s1, 640, %s289_s15, [#allocation6], %s263_s0, %s263_s0, %s264_s7  }
  0x23   :  { %255 = dma.done.wait [#allocation3], 128  }
  0x24   :  { %256 = vsyncadd [#allocation3], 4294967168 }
  0x25   :  { %257 = dma.done.wait [#allocation6], 640  }
  0x26   :  { %258 = vsyncadd [#allocation6], 4294966656  ;;  %v265_v0 = vmov 0.0|0.0   ;;  %vm266_vm0 = vmmov 0   ;;  %v267_v1 = vmov 0.0   ;;  %v42_v2 = vld [vmem:[#allocation5] sm:$0xff] }
  0x27   :  { %175 = vmatprep.subr.bf16.mxu0 %v265_v0  ;;  %172 = vmatprep.mubr.msk.f32.mxu0 %vm266_vm0, %v267_v1  ;;  %v43_v3 = vld [vmem:[#allocation5 + $0x8] sm:$0xff]  ;;  %v44_v4 = vld [vmem:[#allocation5 + $0x10] sm:$0xff]  ;;  %v45_v6 = vld [vmem:[#allocation5 + $0x18] sm:$0xff]  ;;  %vm58_vm1 = vcmask 1043456   ;;  %vm54_vm2 = vcmask 293888   ;;  %s268_s11 = smov [#allocation7]  }
  0x28   :  { %v176_v5 = vpack.c.bf16 %v43_v3, %v42_v2  ;;  %v179_v7 = vpack.c.bf16 %v45_v6, %v44_v4  ;;  %v46_v8 = vld [vmem:[#allocation5 + $0x20] sm:$0xf]  ;;  %v41_v9 = vld [vmem:[#allocation2] sm:$0xff]  ;;  %s143_s12 = sshll.u32 %s268_s11, 4  ;;  %s144_s12 = int_to_ptr.vmem [resolvable:$true] %s143_s12 }
  0x29   :  { %v153_v10 = vld [vmem:[%s337_s2] ss:$0 sm:$0xff]  ;;  %s233_s13 = scalar_lea.vmem %s144_s12, 128  ;;  %p238_p3 = scmp.lt.s32.totalorder %s144_s12, %s144_s12 }
  0x2a   :  { %177 = vmatpush3.bf16.msra.mxu0 %v176_v5  ;;  %p234_p2 = scmp.ne.s32.totalorder %s144_s12, %s233_s13  ;;  %p239_p4 = scmp.lt.s32.totalorder %s233_s13, %s233_s13 }
  0x2b   :  { %178 = vmatprep.subr.bf16.mxu0 %v265_v0 }
  0x2c   :  { %p240_p5 = por %p239_p4, %p238_p3 }
  0x2e   :  { %180 = vmatpush3.bf16.msra.mxu0 %v179_v7  ;;  %p241_p6 = pnand %p240_p5, %p234_p2 }
  0x2f   :  { %170 = vmatprep.subr.mxu0 %v267_v1 }
  0x32   :  { %171 = vmatpush3.msk.msra.mxu0 %vm58_vm1, %v46_v8 }
  0x33   :  { %173 = vmatmul.mubr.msk.f32.vlgmr.msra.gmra.mrb[0].mxu0 %vm54_vm2, %v41_v9 }
 0x106   :  { %v128_v11 = vpop.f32.mrb[0].mxu0 }
 0x107   :  { %v129_v12 = vadd.f32 %v153_v10, %v128_v11  ;;  %v174_v13 = vpop.f32.mrb[1].mxu0 }
 0x109   :  { %v132_v14 = vadd.f32 3.0, %v129_v12 }
 0x10b   :  { %v133_v15 = vmax.f32 %v132_v14, 0.0 }
 0x10d   :  { %v134_v16 = vmin.f32 %v133_v15, 6.0 }
 0x10f   :  { %v135_v17 = vmul.f32 0.16666667, %v134_v16 }
 0x111   :  { %136 = vst [vmem:[#allocation7] sm:$0xff] %v135_v17 }
 0x112   :  { %244 = shalt.err (!%p241_p6)
}
 0x113   :  { %s245_s15 = scalar_lea.hbm %s338_s3, 128 }
 0x114   :  { %p246_p7 = scmp.ne.s32.totalorder %s338_s3, %s245_s15  ;;  %p249_p8 = scmp.lt.u32.totalorder %s245_s15, %s338_s3 }
 0x116   :  { %p251_p9 = pnand %p249_p8, %p246_p7 }
 0x118   :  { %254 = shalt.err (!%p251_p9)
}
 0x119   :  { %146 = dma.vmem_to_hbm [thread:$0]  %s144_s12, 128, %s338_s3, [#allocation4]  }
 0x11a   :  { %259 = dma.done.wait [#allocation4], 128  }
 0x11b   :  { %260 = vsyncadd [#allocation4], 4294967168 }
 0x11c   :  { %150 = vsyncpa [#allocation3], 1 }
 0x11d   :  { %151 = vsyncpa [#allocation6], 1 }
 0x11e   :  { %152 = vsyncpa [#allocation4], 1 }

</bundles_post_ra>
